<compile_context>
chip_gen: v5e
topology: v5e:2x2
jax: 0.10.0
libtpu: 0.0.40
codegen_flags: <defaults>
</compile_context>

<pallas_src>
import functools
import math

import jax
import jax.numpy as jnp
from jax import lax
from jax.experimental import pallas as pl
from jax.experimental.pallas import tpu as pltpu


# ----------------------------------------------------------------------------- kernels

def _cosine_kernel(xn_ref, wn_ref, o_ref):
    """label=None path: one (tm, tn) tile of cos_theta = x_n @ w_n.T (bf16 in, f32 acc)."""
    o_ref[...] = lax.dot_general(
        xn_ref[...], wn_ref[...],
        dimension_numbers=(((1,), (1,)), ((), ())),   # contract K of both (no transpose copy)
        preferred_element_type=jnp.float32)


def _margin_kernel(lab_smem, lab_ref, xn_ref, wn_ref, o_ref, *,
                   scale, margin, eps, tm, tn):
    """label path: ArcFace additive-angular-margin logits for one (tm, tn) tile.

    The margin epilogue only runs on tiles that actually contain a label (scalar gate
    from SMEM-prefetched labels); label-free tiles just write scale * clip(cos_theta).
    """
    i = pl.program_id(0)
    j = pl.program_id(1)

    cos_theta = lax.dot_general(
        xn_ref[...], wn_ref[...],
        dimension_numbers=(((1,), (1,)), ((), ())),
        preferred_element_type=jnp.float32)
    # clamp(cos_theta, -1+eps, 1-eps)  (== cos(acos(clamped)) of the reference)
    cos_c = jnp.clip(cos_theta, -1.0 + eps, 1.0 - eps)

    # Scalar gate: does any row's label of this batch tile fall in this class tile?
    row0 = i * tm
    c0 = j * tn

    def body(r, acc):
        lab = lab_smem[row0 + r]
        hit = jnp.logical_and(lab >= c0, lab < c0 + tn)
        return acc | hit.astype(jnp.int32)

    has_label = lax.fori_loop(0, tm, body, jnp.int32(0))

    @pl.when(has_label == 0)
    def _():
        # No label in this tile: logits are just scale * cos(theta)
        o_ref[...] = scale * cos_c

    @pl.when(has_label > 0)
    def _():
        # one_hot via (globally offset) lane iota vs. the (tm,1) label column
        cls = c0 + lax.broadcasted_iota(jnp.int32, (tm, tn), 1)
        one_hot = cls == lab_ref[...]
        cos_m = math.cos(margin)
        sin_m = math.sin(margin)
        # keep one_hot only where theta <= pi - margin  <=>  cos_theta >= -cos(margin)
        mask = jnp.logical_and(one_hot, cos_c >= -cos_m)
        sin_theta = jnp.sqrt(jnp.maximum(1.0 - cos_c * cos_c, 0.0))
        cos_theta_plus_m = cos_c * cos_m - sin_theta * sin_m
        o_ref[...] = scale * jnp.where(mask, cos_theta_plus_m, cos_c)


# ----------------------------------------------------------------------------- wrapper

def normalize_weight(weight, *, operand_dtype=jnp.bfloat16):
    """F.normalize(weight) in (C, K) layout (no transpose), cast for the MXU.

    Weight is static per forward -> inference callers should call this once and pass
    the result with weight_is_normalized=True.
    """
    w = weight.astype(jnp.float32)
    inv = lax.rsqrt(jnp.maximum(jnp.sum(w * w, axis=-1, keepdims=True), 1e-24))
    return (w * inv).astype(operand_dtype)


def _pick_tile(dim, cap, mult):
    """Largest tile <= cap that divides dim (multiples of `mult`); falls back to dim."""
    if dim <= cap:
        return dim
    start = cap - (cap % mult)
    for t in range(start, 0, -mult):
        if dim % t == 0:
            return t
    return dim  # TODO(synk): pad-and-mask for dims with no nice divisor


def arcface_forward(x, weight, label=None, *, scale=30.0, margin=0.5, eps=1e-6,
                    weight_is_normalized=False, operand_dtype=jnp.bfloat16,
                    tm_cap=256, tn_cap=2048):
    """ArcFace.forward.

    x:      (B, in_features) float
    weight: (out_features, in_features) float (PyTorch layout; or pre-normalized)
    label:  optional (B,) int labels
    """
    B, K = x.shape
    if weight_is_normalized:
        w_n = weight.astype(operand_dtype)
    else:
        w_n = normalize_weight(weight, operand_dtype=operand_dtype)
    C = w_n.shape[0]

    # Normalize x once here (tiny B x K) so the kernel never repeats the row norm
    # across class tiles; MXU operands go in bf16, accumulation stays f32.
    xf = x.astype(jnp.float32)
    inv = lax.rsqrt(jnp.maximum(jnp.sum(xf * xf, axis=-1, keepdims=True), 1e-24))
    x_n = (xf * inv).astype(operand_dtype)

    tm = _pick_tile(B, tm_cap, 8)     # sublane-aligned batch tile
    tn = _pick_tile(C, tn_cap, 128)   # lane-dense, MXU-aligned class tile
    grid = (B // tm, C // tn)

    # index_maps take (i, j) plus any scalar-prefetch refs (ignored here)
    x_spec = pl.BlockSpec((tm, K), lambda i, j, *_: (i, 0))
    w_spec = pl.BlockSpec((tn, K), lambda i, j, *_: (j, 0))
    o_spec = pl.BlockSpec((tm, tn), lambda i, j, *_: (i, j))

    # VMEM budget: double-buffered x/weight/label tiles + output tile, with headroom,
    # clamped to v7x's 64 MiB physical VMEM.
    opb = jnp.dtype(operand_dtype).itemsize
    need = 2 * (tm * K * opb + tn * K * opb + tm * tn * 4 + tm * 4)
    vmem_limit = int(min(max(2 * need, 32 << 20), 64 << 20))
    cparams = pltpu.CompilerParams(
        dimension_semantics=("parallel", "parallel"),   # v7x: split tiles over both TCs
        vmem_limit_bytes=vmem_limit)

    if label is None:
        return pl.pallas_call(
            _cosine_kernel,
            out_shape=jax.ShapeDtypeStruct((B, C), jnp.float32),
            grid=grid,
            in_specs=[x_spec, w_spec],
            out_specs=o_spec,
            compiler_params=cparams,
        )(x_n, w_n)

    lab_i32 = label.astype(jnp.int32)
    lab2d = lab_i32.reshape(B, 1)
    lab_spec = pl.BlockSpec((tm, 1), lambda i, j, *_: (i, 0))
    kernel = functools.partial(_margin_kernel, scale=scale, margin=margin, eps=eps,
                               tm=tm, tn=tn)
    grid_spec = pltpu.PrefetchScalarGridSpec(
        num_scalar_prefetch=1,                # labels -> SMEM, used to gate the epilogue
        grid=grid,
        in_specs=[lab_spec, x_spec, w_spec],
        out_specs=o_spec)
    return pl.pallas_call(
        kernel,
        out_shape=jax.ShapeDtypeStruct((B, C), jnp.float32),
        grid_spec=grid_spec,
        compiler_params=cparams,
    )(lab_i32, lab2d, x_n, w_n)


# ----------------------------------------------------------------------------- reference (pure JAX, for sanity)

def _ref_cosine(x, weight):
    x_n = x / jnp.maximum(jnp.linalg.norm(x, axis=-1, keepdims=True), 1e-12)
    w_n = weight / jnp.maximum(jnp.linalg.norm(weight, axis=-1, keepdims=True), 1e-12)
    return x_n @ w_n.T


def _ref_margin(x, weight, label, *, scale, margin, eps, num_classes):
    ct = _ref_cosine(x, weight)
    theta = jnp.arccos(jnp.clip(ct, -1.0 + eps, 1.0 - eps))
    one_hot = jax.nn.one_hot(label, num_classes, dtype=ct.dtype)
    mask = jnp.where(theta > (math.pi - margin), jnp.zeros_like(one_hot), one_hot)
    logits = jnp.cos(jnp.where(mask.astype(bool), theta + margin, theta))
    return logits * scale


# ----------------------------------------------------------------------------- main

if __name__ == "__main__":
    key = jax.random.PRNGKey(0)
    kx, kw, kl = jax.random.split(key, 3)

    B, in_features, out_features = 8, 64, 128
    scale, margin, eps = 30.0, 0.5, 1e-6

    x = jax.random.normal(kx, (B, in_features), jnp.float32)
    # nn.init.xavier_uniform_ on a (out_features, in_features) weight
    lim = math.sqrt(6.0 / (in_features + out_features))
    weight = jax.random.uniform(kw, (out_features, in_features), jnp.float32, -lim, lim)
    label = jax.random.randint(kl, (B,), 0, out_features, dtype=jnp.int32)

    # Static weight normalization cached once (inference pattern; no per-call HBM transpose).
    w_norm = normalize_weight(weight)

    # label=None path: cosine logits
    cos_theta = arcface_forward(x, w_norm, weight_is_normalized=True)
    # label path: scaled additive-angular-margin logits
    logits = arcface_forward(x, w_norm, label, scale=scale, margin=margin, eps=eps,
                             weight_is_normalized=True)
    cos_theta, logits = jax.block_until_ready((cos_theta, logits))

    assert cos_theta.shape == (B, out_features)
    assert logits.shape == (B, out_features)
    assert bool(jnp.all(jnp.isfinite(cos_theta)))
    assert bool(jnp.all(jnp.isfinite(logits)))

    # Check against the pure-JAX f32 reference; loose tolerances cover the bf16 MXU operands.
    cos_ref = _ref_cosine(x, weight)
    log_ref = _ref_margin(x, weight, label, scale=scale, margin=margin, eps=eps,
                          num_classes=out_features)
    assert bool(jnp.allclose(cos_theta, cos_ref, atol=2e-2, rtol=0.0))
    assert bool(jnp.allclose(logits, log_ref, atol=1.0, rtol=0.0))
    # margin logits lie in [-scale, scale]
    assert bool(jnp.all(jnp.abs(logits) <= scale * (1.0 + 1e-3)))

    print("KERNEL_OK")
</pallas_src>

<mosaic_0001>
module attributes {stable_mosaic.version = 11 : i64} {
  func.func @_cosine_kernel(%arg0: i32, %arg1: i32, %arg2: memref<8x64xbf16, #tpu.memory_space<vmem>>, %arg3: memref<128x64xbf16, #tpu.memory_space<vmem>>, %arg4: memref<8x128xf32, #tpu.memory_space<vmem>>) attributes {dimension_semantics = [#tpu.dimension_semantics<parallel>, #tpu.dimension_semantics<parallel>], iteration_bounds = array<i64: 1, 1>, scalar_prefetch = 0 : i64, scratch_operands = 0 : i64, tpu.core_type = #tpu.core_type<tc>, window_params = [{transform_indices = @transform_0, window_bounds = array<i64: 8, 64>}, {transform_indices = @transform_1, window_bounds = array<i64: 128, 64>}, {transform_indices = @transform_2, window_bounds = array<i64: 8, 128>}]} {
    %c0 = arith.constant 0 : index
    %c0_0 = arith.constant 0 : index
    %0 = vector.load %arg2[%c0, %c0_0] : memref<8x64xbf16, #tpu.memory_space<vmem>>, vector<8x64xbf16>
    %c0_1 = arith.constant 0 : index
    %c0_2 = arith.constant 0 : index
    %1 = vector.load %arg3[%c0_1, %c0_2] : memref<128x64xbf16, #tpu.memory_space<vmem>>, vector<128x64xbf16>
    %cst = arith.constant dense<0.000000e+00> : vector<8x128xf32>
    %2 = tpu.matmul %0, %1, %cst {dimension_numbers = #tpu.dot_dimension_numbers<[1], [1], [0], [0], [0, 0, 1, 0], [], []>} : vector<8x64xbf16>, vector<128x64xbf16>, vector<8x128xf32> -> vector<8x128xf32>
    %c0_3 = arith.constant 0 : index
    %c0_4 = arith.constant 0 : index
    %3 = vector.load %arg4[%c0_3, %c0_4] : memref<8x128xf32, #tpu.memory_space<vmem>>, vector<8x128xf32>
    tpu.vector_store %arg4[%c0_3, %c0_4], %2 {strides = array<i32>} : memref<8x128xf32, #tpu.memory_space<vmem>>, vector<8x128xf32>,
    return
  }
  func.func @transform_0(%arg0: i32, %arg1: i32) -> (i32, i32) {
    %c0_i32 = arith.constant 0 : i32
    %c0_i32_0 = arith.constant 0 : i32
    return %arg0, %c0_i32 : i32, i32
  }
  func.func @transform_1(%arg0: i32, %arg1: i32) -> (i32, i32) {
    %c0_i32 = arith.constant 0 : i32
    %c0_i32_0 = arith.constant 0 : i32
    return %arg1, %c0_i32 : i32, i32
  }
  func.func @transform_2(%arg0: i32, %arg1: i32) -> (i32, i32) {
    %c0_i32 = arith.constant 0 : i32
    return %arg0, %arg1 : i32, i32
  }
}

</mosaic_0001>

<bundles_post_ra>
// kernel: tpu_custom_call.1
= control target key start
LH: loop header
LB: loop body
LE: loop exit
PB: predicated region body
PF: predicated region fallthrough
CT: control target
= control target key end

     0   :  { %vm69_vm0 = vcmask 523264   ;;  %s250_s0 = inlined_call_operand.vmem [shape: bf16[8,64], index: 0, kind: input, shape index: {}]   ;;  %s251_s1 = inlined_call_operand.vmem [shape: bf16[128,64], index: 1, kind: input, shape index: {}]   ;;  %s252_s2 = inlined_call_operand.hbm [shape: f32[8,128], index: 2, kind: output, shape index: {}]  }
   0x1   :  { %v167_v0 = vld [vmem:[%s251_s1 + $0x38] sm:$0xff] }
   0x2   :  { %7 = vsyncpa [#allocation3], 0  ;;  %v95_v1 = vsel %vm69_vm0, %v167_v0, 0  ;;  %v166_v2 = vld [vmem:[%s251_s1 + $0x30] sm:$0xff]  ;;  %v165_v4 = vld [vmem:[%s251_s1 + $0x28] sm:$0xff]  ;;  %s195_s27 = smov [#allocation2]  }
   0x3   :  { %97 = vmatpush.bf16.xpose.msra.mxu0 %v95_v1  ;;  %v92_v3 = vsel %vm69_vm0, %v166_v2, 0  ;;  %v89_v5 = vsel %vm69_vm0, %v165_v4, 0  ;;  %v164_v6 = vld [vmem:[%s251_s1 + $0x20] sm:$0xff]  ;;  %v163_v8 = vld [vmem:[%s251_s1 + $0x18] sm:$0xff]  ;;  %v162_v10 = vld [vmem:[%s251_s1 + $0x10] sm:$0xff]  ;;  %s116_s28 = sshll.u32 %s195_s27, 4  ;;  %s117_s28 = int_to_ptr.vmem [resolvable:$true] %s116_s28 }
   0x4   :  { %v86_v7 = vsel %vm69_vm0, %v164_v6, 0  ;;  %v83_v9 = vsel %vm69_vm0, %v163_v8, 0  ;;  %v80_v11 = vsel %vm69_vm0, %v162_v10, 0  ;;  %v161_v12 = vld [vmem:[%s251_s1 + $0x8] sm:$0xff]  ;;  %v160_v14 = vld [vmem:[%s251_s1] sm:$0xff]  ;;  %s118_s3 = sshll.u32 %s252_s2, 4  ;;  %s119_s3 = int_to_ptr.hbm [resolvable:$true] %s118_s3 }
   0x5   :  { %v77_v13 = vsel %vm69_vm0, %v161_v12, 0  ;;  %v74_v15 = vsel %vm69_vm0, %v160_v14, 0  ;;  %v12_v16 = vld [vmem:[%s250_s0] sm:$0xf] }
   0xb   :  { %98 = vmatpush.bf16.xpose.msra.mxu0 %v92_v3 }
  0x13   :  { %99 = vmatpush.bf16.xpose.msra.mxu0 %v89_v5 }
  0x1b   :  { %100 = vmatpush.bf16.xpose.msra.mxu0 %v86_v7 }
  0x23   :  { %101 = vmatpush.bf16.xpose.msra.mxu0 %v83_v9 }
  0x2b   :  { %102 = vmatpush.bf16.xpose.msra.mxu0 %v80_v11 }
  0x33   :  { %103 = vmatpush.bf16.xpose.msra.mxu0 %v77_v13 }
  0x3b   :  { %104 = vmatpush.bf16.xpose.msra.mxu0 %v74_v15 }
  0x42   :  { %159 = vmatmul.msk.bf16.vlgmr.msra.gmra.mxu0 %vm69_vm0, %v12_v16 }
  0xbf   :  { %v106_v17 = vpop.f32.mrf.mxu0 }
  0xc0   :  { %110 = vst [vmem:[#allocation2] sm:$0xff] %v106_v17 }
  0xc1   :  { %121 = dma.vmem_to_hbm [thread:$0]  %s117_s28, 128, %s119_s3, [#allocation3]  }
  0xc7   :  { %v108_v18 = vpop.f32.mrf.mxu0 }
  0xc8   :  { %193 = dma.done.wait [#allocation3], 128  }
  0xc9   :  { %194 = vsyncadd [#allocation3], 4294967168 }
  0xca   :  { %126 = vsyncpa [#allocation3], 1 }

</bundles_post_ra>
